<compile_context>
chip_gen: v5e
topology: v5e:2x2
jax: 0.10.0
libtpu: 0.0.40
codegen_flags: <defaults>
</compile_context>

<pallas_src>
import functools
from typing import NamedTuple

import jax
import jax.numpy as jnp
from jax.experimental import pallas as pl
from jax.experimental.pallas import tpu as pltpu

LANE = 128


def _round_up(x: int, m: int) -> int:
    return (x + m - 1) // m * m


def _cdiv(a: int, b: int) -> int:
    return (a + b - 1) // b


@functools.lru_cache(maxsize=None)
def _vmem_capacity_bytes() -> int:
    try:
        cap = int(getattr(pltpu.get_tpu_info(), "vmem_capacity_bytes", 0))
        if cap > 0:
            return cap
    except Exception:
        pass
    return 64 * 1024 * 1024  # conservative (v7x-sized) fallback


@functools.lru_cache(maxsize=None)
def _mxu_row_target() -> int:
    # v6e/v7x MXUs are 2x256x256; v5e's are 4x128x128.
    try:
        kind = jax.devices()[0].device_kind.lower()
    except Exception:
        return 128
    return 256 if ("v6" in kind or "v7" in kind or "7x" in kind) else 128


class Plan(NamedTuple):
    B: int
    F_img: int
    E: int
    D: int
    tm: int
    tk: int
    b_pad: int
    k_pad: int
    d_pad: int
    vmem_limit: int


def make_plan(B: int, F_img: int, E: int, D: int) -> Plan:
    tm_tgt = _mxu_row_target()

    # N (feature) padding: lane-dense; 256-aligned on v6e/v7x for real encoder
    # widths (MXU column width), 128 otherwise.
    d_pad = _round_up(D, 256) if (tm_tgt == 256 and D >= 256) else _round_up(D, LANE)

    # M tile: feed the MXU rows, but keep >=2 batch programs when B allows so
    # the "parallel" batch axis can shard across v7x's two TensorCores (pure
    # sequential loop on single-TC v5e/v6e -> negligible cost there).
    b_pad8 = _round_up(B, 8)
    if b_pad8 >= 16:
        tm = min(tm_tgt, _round_up(b_pad8 // 2, 8))
    else:
        tm = b_pad8
    b_pad = _round_up(B, tm)

    # K tile: biggest 128-multiple that fits the per-generation VMEM budget,
    # then split evenly across K steps so padding waste stays minimal.
    cap = _vmem_capacity_bytes()
    budget = int(cap * 0.7)
    fixed = (2 * tm * E * 4              # pooled text tile, f32, double-buffered
             + 2 * E * d_pad * 2         # w_txt, bf16, double-buffered
             + 4 * 1 * d_pad * 4         # two biases, f32, double-buffered
             + 2 * tm * 2 * d_pad * 4)   # output tile, f32, double-buffered
    per_k = 2 * tm * 4 + 2 * d_pad * 2   # per K column: image (f32) + w_img (bf16)
    tk_max = max(LANE, ((budget - fixed) // per_k) // LANE * LANE)
    f_pad_min = _round_up(F_img, LANE)
    nk = _cdiv(f_pad_min, tk_max)
    # TODO(synk): if d_pad ever gets so large that even tk=128 overflows the
    #             budget, add an N-tile grid axis over d_pad instead.
    tk = _round_up(_cdiv(f_pad_min, nk), LANE)
    k_pad = nk * tk

    need = fixed + per_k * tk
    vmem_limit = min(cap, max(need + (8 << 20), 32 << 20))
    return Plan(B, F_img, E, D, tm, tk, b_pad, k_pad, d_pad, vmem_limit)


def _mm_kernel(img_ref, txt_ref, wimg_ref, bimg_ref, wtxt_ref, btxt_ref, out_ref):
    # img_ref : [tm, tk]       f32 image K-tile (bf16 cast on the VPU below)
    # txt_ref : [tm, E]        f32 mean-pooled text (resident across k)
    # wimg_ref: [tk, d_pad]    bf16 image-weight K-tile (streamed over k)
    # wtxt_ref: [E, d_pad]     bf16 text weight (resident, tiny)
    # bimg/btxt: [1, d_pad]    f32 biases
    # out_ref : [tm, 2*d_pad]  f32 output tile; the left half doubles as the
    #                          image-GEMM accumulator across K steps.
    k = pl.program_id(1)
    nk = pl.num_programs(1)
    d_pad = bimg_ref.shape[-1]

    part = jnp.dot(img_ref[...].astype(jnp.bfloat16), wimg_ref[...],
                   preferred_element_type=jnp.float32)

    @pl.when(k == 0)
    def _first():
        out_ref[:, :d_pad] = part
        # Text encoder half at k == 0 so it overlaps the remaining image
        # weight DMA instead of serializing after the last K step.
        r_txt = jnp.dot(txt_ref[...].astype(jnp.bfloat16), wtxt_ref[...],
                        preferred_element_type=jnp.float32)
        out_ref[:, d_pad:] = jnp.maximum(r_txt + btxt_ref[...], 0.0)

    @pl.when(k > 0)
    def _accumulate():
        out_ref[:, :d_pad] += part

    @pl.when(k == nk - 1)
    def _finalize():
        out_ref[:, :d_pad] = jnp.maximum(out_ref[:, :d_pad] + bimg_ref[...], 0.0)


def _pad2d(x, rows, cols):
    pr, pc = rows - x.shape[0], cols - x.shape[1]
    if pr or pc:
        x = jnp.pad(x, ((0, pr), (0, pc)))
    return x


def prepare_mm_params(w_img, b_img, w_txt, b_txt, plan: Plan):
    """Pad + cast the (reused) parameters once; keep them across forward calls."""
    w_img_p = _pad2d(w_img.astype(jnp.bfloat16), plan.k_pad, plan.d_pad)
    w_txt_p = _pad2d(w_txt.astype(jnp.bfloat16), plan.E, plan.d_pad)
    b_img_p = _pad2d(b_img.reshape(1, -1).astype(jnp.float32), 1, plan.d_pad)
    b_txt_p = _pad2d(b_txt.reshape(1, -1).astype(jnp.float32), 1, plan.d_pad)
    return w_img_p, b_img_p, w_txt_p, b_txt_p


@functools.partial(jax.jit, static_argnames=("plan",))
def _mm_forward_impl(image, text, w_img_p, b_img_p, w_txt_p, b_txt_p, *, plan: Plan):
    B, F_img, E, D = plan.B, plan.F_img, plan.E, plan.D
    tm, tk, b_pad, k_pad, d_pad = plan.tm, plan.tk, plan.b_pad, plan.k_pad, plan.d_pad

    # Activations stay f32 (one HBM pass; the bf16 cast happens on the VPU in
    # the kernel).  Pad only when shapes require it; text is pooled to [B, E]
    # here (single XLA reduce) so the kernel never sees the S axis.
    img_flat = _pad2d(image.reshape(B, F_img), b_pad, k_pad)
    txt_mean = _pad2d(jnp.mean(text, axis=1), b_pad, E)

    grid = (b_pad // tm, k_pad // tk)

    out_pad = pl.pallas_call(
        _mm_kernel,
        out_shape=jax.ShapeDtypeStruct((b_pad, 2 * d_pad), jnp.float32),
        grid_spec=pltpu.PrefetchScalarGridSpec(
            num_scalar_prefetch=0,
            grid=grid,
            in_specs=[
                pl.BlockSpec((tm, tk), lambda i, k: (i, k)),      # image K-tile
                pl.BlockSpec((tm, E), lambda i, k: (i, 0)),       # pooled text
                # NOTE: profile-gated option: pipeline_mode=pl.Buffered(3) on
                # the w_img spec if the weight DMA shows up exposed.
                pl.BlockSpec((tk, d_pad), lambda i, k: (k, 0)),   # w_img K-tile
                pl.BlockSpec((1, d_pad), lambda i, k: (0, 0)),    # b_img
                pl.BlockSpec((E, d_pad), lambda i, k: (0, 0)),    # w_txt
                pl.BlockSpec((1, d_pad), lambda i, k: (0, 0)),    # b_txt
            ],
            out_specs=pl.BlockSpec((tm, 2 * d_pad), lambda i, k: (i, 0)),
        ),
        compiler_params=pltpu.CompilerParams(
            dimension_semantics=("parallel", "arbitrary"),
            vmem_limit_bytes=plan.vmem_limit,
        ),
    )(img_flat, txt_mean, w_img_p, b_img_p, w_txt_p, b_txt_p)

    # out_pad[:, :d_pad] = repr_img, out_pad[:, d_pad:] = repr_txt.
    if D == d_pad:
        return out_pad if B == b_pad else out_pad[:B]
    return jnp.concatenate(
        [out_pad[:B, :D], out_pad[:B, d_pad:d_pad + D]], axis=-1)


def mm_model_forward(image, text, w_img, b_img, w_txt, b_txt):
    """image: [B, C, H, W] (NCHW), text: [B, S, E] -> [B, 2*D] float32."""
    B, C, H, W = image.shape
    F_img = C * H * W
    E = text.shape[-1]
    D = w_img.shape[-1]
    plan = make_plan(B, F_img, E, D)
    # In real use prepare_mm_params is called once and its outputs cached;
    # here it runs per call for a self-contained script.
    params = prepare_mm_params(w_img, b_img, w_txt, b_txt, plan)
    return _mm_forward_impl(image, text, *params, plan=plan)


if __name__ == "__main__":
    # Small, deterministic shapes consistent with the multimodal forward.
    B, C, H, W = 2, 4, 16, 16      # image: NCHW
    S, E = 8, 32                   # text : [B, S, E]
    D = 32                         # encoder hidden dim

    key = jax.random.PRNGKey(0)
    k_img, k_txt, k_wimg, k_bimg, k_wtxt, k_btxt = jax.random.split(key, 6)

    image = jax.random.normal(k_img, (B, C, H, W), dtype=jnp.float32)
    text = jax.random.normal(k_txt, (B, S, E), dtype=jnp.float32)

    # Deterministic parameter init (synthetic; no checkpoint loading).
    w_img = jax.random.normal(k_wimg, (C * H * W, D), dtype=jnp.float32) * 0.02
    b_img = jax.random.normal(k_bimg, (1, D), dtype=jnp.float32) * 0.02
    w_txt = jax.random.normal(k_wtxt, (E, D), dtype=jnp.float32) * 0.02
    b_txt = jax.random.normal(k_btxt, (1, D), dtype=jnp.float32) * 0.02

    out = mm_model_forward(image, text, w_img, b_img, w_txt, b_txt)
    jax.block_until_ready(out)

    # Pure-JAX reference with the same bf16 operand rounding (f32 accumulate),
    # so the only difference vs the kernel is summation order.
    f32 = jnp.float32
    img_bf = image.reshape(B, -1).astype(jnp.bfloat16).astype(f32)
    wimg_bf = w_img.astype(jnp.bfloat16).astype(f32)
    txt_bf = jnp.mean(text, axis=1).astype(jnp.bfloat16).astype(f32)
    wtxt_bf = w_txt.astype(jnp.bfloat16).astype(f32)
    ref_img = jnp.maximum(img_bf @ wimg_bf + b_img, 0.0)
    ref_txt = jnp.maximum(txt_bf @ wtxt_bf + b_txt, 0.0)
    ref = jnp.concatenate([ref_img, ref_txt], axis=-1)

    assert out.shape == (B, 2 * D), out.shape
    max_err = float(jnp.max(jnp.abs(out - ref)))
    assert jnp.allclose(out, ref, atol=2e-3, rtol=2e-3), max_err

    print("KERNEL_OK")
</pallas_src>

<mosaic_0001>
module attributes {stable_mosaic.version = 11 : i64} {
  func.func @_mm_kernel(%arg0: i32, %arg1: i32, %arg2: memref<8x1024xf32, #tpu.memory_space<vmem>>, %arg3: memref<8x32xf32, #tpu.memory_space<vmem>>, %arg4: memref<1024x128xbf16, #tpu.memory_space<vmem>>, %arg5: memref<1x128xf32, #tpu.memory_space<vmem>>, %arg6: memref<32x128xbf16, #tpu.memory_space<vmem>>, %arg7: memref<1x128xf32, #tpu.memory_space<vmem>>, %arg8: memref<8x256xf32, #tpu.memory_space<vmem>>) attributes {dimension_semantics = [#tpu.dimension_semantics<parallel>, #tpu.dimension_semantics<arbitrary>], iteration_bounds = array<i64: 1, 1>, scalar_prefetch = 0 : i64, scratch_operands = 0 : i64, tpu.core_type = #tpu.core_type<tc>, window_params = [{transform_indices = @transform_0, window_bounds = array<i64: 8, 1024>}, {transform_indices = @transform_1, window_bounds = array<i64: 8, 32>}, {transform_indices = @transform_2, window_bounds = array<i64: 1024, 128>}, {pipeline_mode = #tpu.pipeline_mode<synchronous>, transform_indices = @transform_3, window_bounds = array<i64: 1, 128>}, {pipeline_mode = #tpu.pipeline_mode<synchronous>, transform_indices = @transform_4, window_bounds = array<i64: 32, 128>}, {pipeline_mode = #tpu.pipeline_mode<synchronous>, transform_indices = @transform_5, window_bounds = array<i64: 1, 128>}, {transform_indices = @transform_6, window_bounds = array<i64: 8, 256>}]} {
    %c0 = arith.constant 0 : index
    %c0_0 = arith.constant 0 : index
    %0 = vector.load %arg2[%c0, %c0_0] : memref<8x1024xf32, #tpu.memory_space<vmem>>, vector<8x1024xf32>
    %1 = arith.truncf %0 : vector<8x1024xf32> to vector<8x1024xbf16>
    %c0_1 = arith.constant 0 : index
    %c0_2 = arith.constant 0 : index
    %2 = vector.load %arg4[%c0_1, %c0_2] : memref<1024x128xbf16, #tpu.memory_space<vmem>>, vector<1024x128xbf16>
    %cst = arith.constant dense<0.000000e+00> : vector<8x128xf32>
    %3 = tpu.matmul %1, %2, %cst {dimension_numbers = #tpu.dot_dimension_numbers<[1], [0], [0], [1], [0, 0, 1, 1], [], []>} : vector<8x1024xbf16>, vector<1024x128xbf16>, vector<8x128xf32> -> vector<8x128xf32>
    %c0_i32 = arith.constant 0 : i32
    %4 = arith.cmpi eq, %arg1, %c0_i32 : i32
    %5 = arith.extui %4 : i1 to i32
    %c0_i32_3 = arith.constant 0 : i32
    %6 = arith.cmpi ne, %5, %c0_i32_3 : i32
    scf.if %6 {
      %c0_8 = arith.constant 0 : index
      %c0_9 = arith.constant 0 : index
      %13 = vector.load %arg8[%c0_8, %c0_9] : memref<8x256xf32, #tpu.memory_space<vmem>>, vector<8x128xf32>
      tpu.vector_store %arg8[%c0_8, %c0_9], %3 {strides = array<i32>} : memref<8x256xf32, #tpu.memory_space<vmem>>, vector<8x128xf32>,
      %c0_10 = arith.constant 0 : index
      %c0_11 = arith.constant 0 : index
      %14 = vector.load %arg3[%c0_10, %c0_11] : memref<8x32xf32, #tpu.memory_space<vmem>>, vector<8x32xf32>
      %15 = arith.truncf %14 : vector<8x32xf32> to vector<8x32xbf16>
      %c0_12 = arith.constant 0 : index
      %c0_13 = arith.constant 0 : index
      %16 = vector.load %arg6[%c0_12, %c0_13] : memref<32x128xbf16, #tpu.memory_space<vmem>>, vector<32x128xbf16>
      %cst_14 = arith.constant dense<0.000000e+00> : vector<8x128xf32>
      %17 = tpu.matmul %15, %16, %cst_14 {dimension_numbers = #tpu.dot_dimension_numbers<[1], [0], [0], [1], [0, 0, 1, 1], [], []>} : vector<8x32xbf16>, vector<32x128xbf16>, vector<8x128xf32> -> vector<8x128xf32>
      %c0_15 = arith.constant 0 : index
      %c0_16 = arith.constant 0 : index
      %18 = vector.load %arg7[%c0_15, %c0_16] : memref<1x128xf32, #tpu.memory_space<vmem>>, vector<1x128xf32>
      %19 = vector.broadcast %18 : vector<1x128xf32> to vector<8x128xf32>
      %20 = arith.addf %17, %19 : vector<8x128xf32>
      %cst_17 = arith.constant 0.000000e+00 : f32
      %21 = vector.broadcast %cst_17 : f32 to vector<8x128xf32>
      %22 = arith.maximumf %20, %21 : vector<8x128xf32>
      %c0_18 = arith.constant 0 : index
      %c128 = arith.constant 128 : index
      %23 = vector.load %arg8[%c0_18, %c128] : memref<8x256xf32, #tpu.memory_space<vmem>>, vector<8x128xf32>
      tpu.vector_store %arg8[%c0_18, %c128], %22 {strides = array<i32>} : memref<8x256xf32, #tpu.memory_space<vmem>>, vector<8x128xf32>,
    } else {
    }
    %c0_i32_4 = arith.constant 0 : i32
    %7 = arith.cmpi sgt, %arg1, %c0_i32_4 : i32
    %8 = arith.extui %7 : i1 to i32
    %c0_i32_5 = arith.constant 0 : i32
    %9 = arith.cmpi ne, %8, %c0_i32_5 : i32
    scf.if %9 {
      %c0_8 = arith.constant 0 : index
      %c0_9 = arith.constant 0 : index
      %13 = vector.load %arg8[%c0_8, %c0_9] : memref<8x256xf32, #tpu.memory_space<vmem>>, vector<8x128xf32>
      %14 = arith.addf %13, %3 : vector<8x128xf32>
      %c0_10 = arith.constant 0 : index
      %c0_11 = arith.constant 0 : index
      %15 = vector.load %arg8[%c0_10, %c0_11] : memref<8x256xf32, #tpu.memory_space<vmem>>, vector<8x128xf32>
      tpu.vector_store %arg8[%c0_10, %c0_11], %14 {strides = array<i32>} : memref<8x256xf32, #tpu.memory_space<vmem>>, vector<8x128xf32>,
    } else {
    }
    %c0_i32_6 = arith.constant 0 : i32
    %10 = arith.cmpi eq, %arg1, %c0_i32_6 : i32
    %11 = arith.extui %10 : i1 to i32
    %c0_i32_7 = arith.constant 0 : i32
    %12 = arith.cmpi ne, %11, %c0_i32_7 : i32
    scf.if %12 {
      %c0_8 = arith.constant 0 : index
      %c0_9 = arith.constant 0 : index
      %13 = vector.load %arg8[%c0_8, %c0_9] : memref<8x256xf32, #tpu.memory_space<vmem>>, vector<8x128xf32>
      %c0_10 = arith.constant 0 : index
      %c0_11 = arith.constant 0 : index
      %14 = vector.load %arg5[%c0_10, %c0_11] : memref<1x128xf32, #tpu.memory_space<vmem>>, vector<1x128xf32>
      %15 = vector.broadcast %14 : vector<1x128xf32> to vector<8x128xf32>
      %16 = arith.addf %13, %15 : vector<8x128xf32>
      %cst_12 = arith.constant 0.000000e+00 : f32
      %17 = vector.broadcast %cst_12 : f32 to vector<8x128xf32>
      %18 = arith.maximumf %16, %17 : vector<8x128xf32>
      %c0_13 = arith.constant 0 : index
      %c0_14 = arith.constant 0 : index
      %19 = vector.load %arg8[%c0_13, %c0_14] : memref<8x256xf32, #tpu.memory_space<vmem>>, vector<8x128xf32>
      tpu.vector_store %arg8[%c0_13, %c0_14], %18 {strides = array<i32>} : memref<8x256xf32, #tpu.memory_space<vmem>>, vector<8x128xf32>,
    } else {
    }
    return
  }
  func.func @transform_0(%arg0: i32, %arg1: i32) -> (i32, i32) {
    %c0_i32 = arith.constant 0 : i32
    return %arg0, %arg1 : i32, i32
  }
  func.func @transform_1(%arg0: i32, %arg1: i32) -> (i32, i32) {
    %c0_i32 = arith.constant 0 : i32
    %c0_i32_0 = arith.constant 0 : i32
    return %arg0, %c0_i32 : i32, i32
  }
  func.func @transform_2(%arg0: i32, %arg1: i32) -> (i32, i32) {
    %c0_i32 = arith.constant 0 : i32
    %c0_i32_0 = arith.constant 0 : i32
    return %arg1, %c0_i32 : i32, i32
  }
  func.func @transform_3(%arg0: i32, %arg1: i32) -> (i32, i32) {
    %c0_i32 = arith.constant 0 : i32
    %c0_i32_0 = arith.constant 0 : i32
    %c0_i32_1 = arith.constant 0 : i32
    return %c0_i32, %c0_i32_0 : i32, i32
  }
  func.func @transform_4(%arg0: i32, %arg1: i32) -> (i32, i32) {
    %c0_i32 = arith.constant 0 : i32
    %c0_i32_0 = arith.constant 0 : i32
    %c0_i32_1 = arith.constant 0 : i32
    return %c0_i32, %c0_i32_0 : i32, i32
  }
  func.func @transform_5(%arg0: i32, %arg1: i32) -> (i32, i32) {
    %c0_i32 = arith.constant 0 : i32
    %c0_i32_0 = arith.constant 0 : i32
    %c0_i32_1 = arith.constant 0 : i32
    return %c0_i32, %c0_i32_0 : i32, i32
  }
  func.func @transform_6(%arg0: i32, %arg1: i32) -> (i32, i32) {
    %c0_i32 = arith.constant 0 : i32
    %c0_i32_0 = arith.constant 0 : i32
    return %arg0, %c0_i32 : i32, i32
  }
}

</mosaic_0001>

<bundles_post_ra>
// kernel: _mm_forward_impl.1
= control target key start
LH: loop header
LB: loop body
LE: loop exit
PB: predicated region body
PF: predicated region fallthrough
CT: control target
= control target key end

     0   :  { %11 = vsyncpa [#allocation3], 0  ;;  %s1103_s24 = smov [#allocation2]   ;;  %s1104_s26 = smov 64   ;;  %s1189_s0 = inlined_call_operand.vmem [shape: f32[8,1024], index: 0, kind: input, shape index: {}]   ;;  %s1190_s1 = inlined_call_operand.vmem [shape: f32[8,32], index: 1, kind: input, shape index: {}]   ;;  %s1191_s2 = inlined_call_operand.hbm [shape: bf16[1024,128], index: 2, kind: input, shape index: {}]   ;;  %s1192_s3 = inlined_call_operand.vmem [shape: f32[1,128], index: 3, kind: input, shape index: {}]   ;;  %s1193_s4 = inlined_call_operand.vmem [shape: bf16[32,128], index: 4, kind: input, shape index: {}]   ;;  %s1194_s5 = inlined_call_operand.vmem [shape: f32[1,128], index: 5, kind: input, shape index: {}]   ;;  %s1195_s6 = inlined_call_operand.vmem [shape: f32[8,256], index: 6, kind: output, shape index: {}]  }
   0x1   :  { %s20_s23 = sshll.u32 %s1191_s2, 4  ;;  %s22_s25 = sshll.u32 %s1103_s24, 4  ;;  %s21_s23 = int_to_ptr.hbm [resolvable:$true] %s20_s23  ;;  %s23_s25 = int_to_ptr.vmem [resolvable:$true] %s22_s25 }
   0x2   :  { %s1105_s27 = smov 4  }
   0x3   :  { %28 = dma.hbm_to_vmem [thread:$0]  %s21_s23, 8192, %s23_s25, [#allocation3], %s1104_s26, %s1104_s26, %s1105_s27  }
   0x4   :  { %1101 = dma.done.wait [#allocation3], 8192  }
   0x5   :  { %1102 = vsyncadd [#allocation3], 4294959104  ;;  %v1013_v0 = vld [vmem:[#allocation2 + $0x38] sm:$0xff]  ;;  %v1012_v4 = vld [vmem:[#allocation2 + $0x30] sm:$0xff]  ;;  %vm699_vm0 = vcmask 261120  }
   0x6   :  { %v1021_v1 = vld [vmem:[#allocation2 + $0x78] sm:$0xff]  ;;  %568 = vmatpush.bf16.msra.mxu0 %v1013_v0  ;;  %v1020_v5 = vld [vmem:[#allocation2 + $0x70] sm:$0xff]  ;;  %v1011_v8 = vld [vmem:[#allocation2 + $0x28] sm:$0xff] }
   0x7   :  { %v1029_v2 = vld [vmem:[#allocation2 + $0xb8] sm:$0xff]  ;;  %581 = vmatpush.bf16.msra.mxu1 %v1021_v1  ;;  %v1028_v6 = vld [vmem:[#allocation2 + $0xb0] sm:$0xff]  ;;  %v1019_v9 = vld [vmem:[#allocation2 + $0x68] sm:$0xff] }
   0x8   :  { %v1037_v3 = vld [vmem:[#allocation2 + $0xf8] sm:$0xff]  ;;  %594 = vmatpush.bf16.msra.mxu2 %v1029_v2  ;;  %v1036_v7 = vld [vmem:[#allocation2 + $0xf0] sm:$0xff]  ;;  %v1027_v10 = vld [vmem:[#allocation2 + $0xa8] sm:$0xff] }
   0x9   :  { %607 = vmatpush.bf16.msra.mxu3 %v1037_v3  ;;  %v1035_v11 = vld [vmem:[#allocation2 + $0xe8] sm:$0xff]  ;;  %v1010_v12 = vld [vmem:[#allocation2 + $0x20] sm:$0xff]  ;;  %v1009_v16 = vld [vmem:[#allocation2 + $0x18] sm:$0xff] }
   0xa   :  { %569 = vmatpush.bf16.msra.mxu0 %v1012_v4  ;;  %v1018_v13 = vld [vmem:[#allocation2 + $0x60] sm:$0xff]  ;;  %v1017_v17 = vld [vmem:[#allocation2 + $0x58] sm:$0xff]  ;;  %v1008_v20 = vld [vmem:[#allocation2 + $0x10] sm:$0xff] }
   0xb   :  { %582 = vmatpush.bf16.msra.mxu1 %v1020_v5  ;;  %v1026_v14 = vld [vmem:[#allocation2 + $0xa0] sm:$0xff]  ;;  %v1025_v18 = vld [vmem:[#allocation2 + $0x98] sm:$0xff]  ;;  %v1016_v21 = vld [vmem:[#allocation2 + $0x50] sm:$0xff] }
   0xc   :  { %595 = vmatpush.bf16.msra.mxu2 %v1028_v6  ;;  %v1034_v15 = vld [vmem:[#allocation2 + $0xe0] sm:$0xff]  ;;  %v1033_v19 = vld [vmem:[#allocation2 + $0xd8] sm:$0xff]  ;;  %v1024_v22 = vld [vmem:[#allocation2 + $0x90] sm:$0xff] }
   0xd   :  { %608 = vmatpush.bf16.msra.mxu3 %v1036_v7  ;;  %v1032_v23 = vld [vmem:[#allocation2 + $0xd0] sm:$0xff]  ;;  %v1007_v24 = vld [vmem:[#allocation2 + $0x8] sm:$0xff]  ;;  %v1006_v28 = vld [vmem:[#allocation2] sm:$0xff] }
   0xe   :  { %570 = vmatpush.bf16.msra.mxu0 %v1011_v8  ;;  %v1015_v25 = vld [vmem:[#allocation2 + $0x48] sm:$0xff]  ;;  %v1014_v29 = vld [vmem:[#allocation2 + $0x40] sm:$0xff]  ;;  %v1045_v32 = vld [vmem:[#allocation2 + $0x138] sm:$0xff] }
   0xf   :  { %583 = vmatpush.bf16.msra.mxu1 %v1019_v9  ;;  %v1023_v26 = vld [vmem:[#allocation2 + $0x88] sm:$0xff]  ;;  %v1022_v30 = vld [vmem:[#allocation2 + $0x80] sm:$0xff]  ;;  %v42_v34 = vld [vmem:[%s1189_s0 + $0x10] sm:$0xff] }
  0x10   :  { %596 = vmatpush.bf16.msra.mxu2 %v1027_v10  ;;  %v1031_v27 = vld [vmem:[#allocation2 + $0xc8] sm:$0xff]  ;;  %v1030_v31 = vld [vmem:[#allocation2 + $0xc0] sm:$0xff]  ;;  %v1053_v35 = vld [vmem:[#allocation2 + $0x178] sm:$0xff]  ;;  %v50_v41 = vpack.c.bf16 %v42_v34, %v42_v34 }
  0x11   :  { %609 = vmatpush.bf16.msra.mxu3 %v1035_v11  ;;  %v40_v33 = vld [vmem:[%s1189_s0] sm:$0xff]  ;;  %v43_v36 = vld [vmem:[%s1189_s0 + $0x18] sm:$0xff]  ;;  %v41_v37 = vld [vmem:[%s1189_s0 + $0x8] sm:$0xff] }
  0x12   :  { %571 = vmatpush.bf16.msra.mxu0 %v1010_v12  ;;  %v1061_v38 = vld [vmem:[#allocation2 + $0x1b8] sm:$0xff]  ;;  %v48_v40 = vpack.c.bf16 %v40_v33, %v40_v33  ;;  %v51_v42 = vpack.c.bf16 %v43_v36, %v43_v36  ;;  %v49_v43 = vpack.c.bf16 %v41_v37, %v41_v37  ;;  %v1044_v44 = vld [vmem:[#allocation2 + $0x130] sm:$0xff]  ;;  %v1043_v48 = vld [vmem:[#allocation2 + $0x128] sm:$0xff] }
  0x13   :  { %584 = vmatpush.bf16.msra.mxu1 %v1018_v13  ;;  %v1069_v39 = vld [vmem:[#allocation2 + $0x1f8] sm:$0xff]  ;;  %v1052_v45 = vld [vmem:[#allocation2 + $0x170] sm:$0xff]  ;;  %v1051_v49 = vld [vmem:[#allocation2 + $0x168] sm:$0xff] }
  0x14   :  { %597 = vmatpush.bf16.msra.mxu2 %v1026_v14  ;;  %v1060_v46 = vld [vmem:[#allocation2 + $0x1b0] sm:$0xff]  ;;  %v1059_v50 = vld [vmem:[#allocation2 + $0x1a8] sm:$0xff]  ;;  %v1042_v52 = vld [vmem:[#allocation2 + $0x120] sm:$0xff] }
  0x15   :  { %610 = vmatpush.bf16.msra.mxu3 %v1034_v15  ;;  %v1068_v47 = vld [vmem:[#allocation2 + $0x1f0] sm:$0xff]  ;;  %v1067_v51 = vld [vmem:[#allocation2 + $0x1e8] sm:$0xff]  ;;  %v1050_v53 = vld [vmem:[#allocation2 + $0x160] sm:$0xff] }
  0x16   :  { %572 = vmatpush.bf16.msra.mxu0 %v1009_v16  ;;  %v1058_v54 = vld [vmem:[#allocation2 + $0x1a0] sm:$0xff]  ;;  %v1041_v56 = vld [vmem:[#allocation2 + $0x118] sm:$0xff]  ;;  %v1040_v60 = vld [vmem:[#allocation2 + $0x110] sm:$0xff] }
  0x17   :  { %585 = vmatpush.bf16.msra.mxu1 %v1017_v17  ;;  %v1066_v55 = vld [vmem:[#allocation2 + $0x1e0] sm:$0xff]  ;;  %v1049_v57 = vld [vmem:[#allocation2 + $0x158] sm:$0xff]  ;;  %v1048_v61 = vld [vmem:[#allocation2 + $0x150] sm:$0xff] }
  0x18   :  { %598 = vmatpush.bf16.msra.mxu2 %v1025_v18  ;;  %v1057_v58 = vld [vmem:[#allocation2 + $0x198] sm:$0xff]  ;;  %v1056_v62 = vld [vmem:[#allocation2 + $0x190] sm:$0xff]  ;;  %v1039_v0 = vld [vmem:[#allocation2 + $0x108] sm:$0xff] }
  0x19   :  { %611 = vmatpush.bf16.msra.mxu3 %v1033_v19  ;;  %v1065_v59 = vld [vmem:[#allocation2 + $0x1d8] sm:$0xff]  ;;  %v1064_v63 = vld [vmem:[#allocation2 + $0x1d0] sm:$0xff]  ;;  %v1047_v1 = vld [vmem:[#allocation2 + $0x148] sm:$0xff] }
  0x1a   :  { %573 = vmatpush.bf16.msra.mxu0 %v1008_v20  ;;  %v1055_v2 = vld [vmem:[#allocation2 + $0x188] sm:$0xff]  ;;  %v1038_v4 = vld [vmem:[#allocation2 + $0x100] sm:$0xff]  ;;  %v46_v10 = vld [vmem:[%s1189_s0 + $0x30] sm:$0xff] }
  0x1b   :  { %586 = vmatpush.bf16.msra.mxu1 %v1016_v21  ;;  %v1063_v3 = vld [vmem:[#allocation2 + $0x1c8] sm:$0xff]  ;;  %v1054_v5 = vld [vmem:[#allocation2 + $0x180] sm:$0xff]  ;;  %v47_v11 = vld [vmem:[%s1189_s0 + $0x38] sm:$0xff]  ;;  %v54_v15 = vpack.c.bf16 %v46_v10, %v46_v10 }
  0x1c   :  { %599 = vmatpush.bf16.msra.mxu2 %v1024_v22  ;;  %v1046_v6 = vld [vmem:[#allocation2 + $0x140] sm:$0xff]  ;;  %v45_v8 = vld [vmem:[%s1189_s0 + $0x28] sm:$0xff]  ;;  %v55_v16 = vpack.c.bf16 %v47_v11, %v47_v11 }
  0x1d   :  { %612 = vmatpush.bf16.msra.mxu3 %v1032_v23  ;;  %v44_v7 = vld [vmem:[%s1189_s0 + $0x20] sm:$0xff]  ;;  %v1071_v12 = vld [vmem:[%s1193_s4 + $0x8] sm:$0xff]  ;;  %v53_v14 = vpack.c.bf16 %v45_v8, %v45_v8 }
  0x1e   :  { %574 = vmatpush.bf16.msra.mxu0 %v1007_v24  ;;  %v1062_v9 = vld [vmem:[#allocation2 + $0x1c0] sm:$0xff]  ;;  %v52_v13 = vpack.c.bf16 %v44_v7, %v44_v7 }
  0x1f   :  { %587 = vmatpush.bf16.msra.mxu1 %v1015_v25  ;;  %v1070_v17 = vld [vmem:[%s1193_s4] sm:$0xff] }
  0x20   :  { %600 = vmatpush.bf16.msra.mxu2 %v1023_v26  ;;  %v677_v18 = vld [vmem:[%s1190_s1] sm:$0xff] }
  0x21   :  { %613 = vmatpush.bf16.msra.mxu3 %v1031_v27  ;;  %v678_v19 = vpack.c.bf16 %v677_v18, %v677_v18 }
  0x22   :  { %575 = vmatpush.bf16.msra.mxu0 %v1006_v28 }
  0x23   :  { %588 = vmatpush.bf16.msra.mxu1 %v1014_v29 }
  0x24   :  { %601 = vmatpush.bf16.msra.mxu2 %v1022_v30 }
  0x25   :  { %614 = vmatpush.bf16.msra.mxu3 %v1030_v31  ;;  %576 = vmatmul.bf16.vlgmr.msra.gmra.mxu0 %v48_v40 }
  0x26   :  { %620 = vmatpush.bf16.msrb.mxu0 %v1045_v32  ;;  %589 = vmatmul.bf16.vlgmr.msra.gmra.mxu1 %v49_v43  ;;  %v1076_v43 = vld [vmem:[%s1194_s5] ss:$0 sm:$0xff] }
  0x27   :  { %633 = vmatpush.bf16.msrb.mxu1 %v1053_v35  ;;  %602 = vmatmul.bf16.vlgmr.msra.gmra.mxu2 %v50_v41 }
  0x28   :  { %646 = vmatpush.bf16.msrb.mxu2 %v1061_v38  ;;  %615 = vmatmul.bf16.vlgmr.msra.gmra.mxu3 %v51_v42  ;;  %v1075_v38 = vld [vmem:[%s1192_s3] ss:$0 sm:$0xff] }
  0x29   :  { %659 = vmatpush.bf16.msrb.mxu3 %v1069_v39 }
  0x2a   :  { %621 = vmatpush.bf16.msrb.mxu0 %v1044_v44 }
  0x2b   :  { %634 = vmatpush.bf16.msrb.mxu1 %v1052_v45 }
  0x2c   :  { %647 = vmatpush.bf16.msrb.mxu2 %v1060_v46 }
  0x2d   :  { %660 = vmatpush.bf16.msrb.mxu3 %v1068_v47 }
  0x2e   :  { %622 = vmatpush.bf16.msrb.mxu0 %v1043_v48 }
  0x2f   :  { %635 = vmatpush.bf16.msrb.mxu1 %v1051_v49 }
  0x30   :  { %648 = vmatpush.bf16.msrb.mxu2 %v1059_v50 }
  0x31   :  { %661 = vmatpush.bf16.msrb.mxu3 %v1067_v51 }
  0x32   :  { %623 = vmatpush.bf16.msrb.mxu0 %v1042_v52 }
  0x33   :  { %636 = vmatpush.bf16.msrb.mxu1 %v1050_v53 }
  0x34   :  { %649 = vmatpush.bf16.msrb.mxu2 %v1058_v54 }
  0x35   :  { %662 = vmatpush.bf16.msrb.mxu3 %v1066_v55 }
  0x36   :  { %624 = vmatpush.bf16.msrb.mxu0 %v1041_v56 }
  0x37   :  { %637 = vmatpush.bf16.msrb.mxu1 %v1049_v57 }
  0x38   :  { %650 = vmatpush.bf16.msrb.mxu2 %v1057_v58 }
  0x39   :  { %663 = vmatpush.bf16.msrb.mxu3 %v1065_v59 }
  0x3a   :  { %625 = vmatpush.bf16.msrb.mxu0 %v1040_v60 }
  0x3b   :  { %638 = vmatpush.bf16.msrb.mxu1 %v1048_v61 }
  0x3c   :  { %651 = vmatpush.bf16.msrb.mxu2 %v1056_v62 }
  0x3d   :  { %664 = vmatpush.bf16.msrb.mxu3 %v1064_v63 }
  0x3e   :  { %626 = vmatpush.bf16.msrb.mxu0 %v1039_v0 }
  0x3f   :  { %639 = vmatpush.bf16.msrb.mxu1 %v1047_v1 }
  0x40   :  { %652 = vmatpush.bf16.msrb.mxu2 %v1055_v2 }
  0x41   :  { %665 = vmatpush.bf16.msrb.mxu3 %v1063_v3 }
  0x42   :  { %627 = vmatpush.bf16.msrb.mxu0 %v1038_v4 }
  0x43   :  { %640 = vmatpush.bf16.msrb.mxu1 %v1046_v6 }
  0x44   :  { %653 = vmatpush.bf16.msrb.mxu2 %v1054_v5 }
  0x45   :  { %666 = vmatpush.bf16.msrb.mxu3 %v1062_v9  ;;  %628 = vmatmul.bf16.vlgmr.msrb.gmra.mxu0 %v52_v13 }
  0x46   :  { %709 = vmatpush.bf16.msra.mxu0 %v1071_v12  ;;  %641 = vmatmul.bf16.vlgmr.msrb.gmra.mxu1 %v53_v14 }
  0x47   :  { %654 = vmatmul.bf16.vlgmr.msrb.gmra.mxu2 %v54_v15 }
  0x48   :  { %667 = vmatmul.bf16.vlgmr.msrb.gmra.mxu3 %v55_v16 }
  0x4a   :  { %710 = vmatpush.bf16.msra.mxu0 %v1070_v17 }
  0x55   :  { %1005 = vmatmul.msk.bf16.vlgmr.msra.gmra.mxu0 %vm699_vm0, %v678_v19 }
  0xa2   :  { %v577_v20 = vpop.f32.mrf.mxu0 }
  0xa3   :  { %v590_v21 = vpop.f32.mrf.mxu1 }
  0xa4   :  { %v591_v28 = vadd.f32 %v590_v21, %v577_v20 }
  0xaa   :  { %v603_v22 = vpop.f32.mrf.mxu2  ;;  %v579_v24 = vpop.f32.mrf.mxu0 }
  0xab   :  { %v616_v23 = vpop.f32.mrf.mxu3  ;;  %v592_v25 = vpop.f32.mrf.mxu1  ;;  %v604_v29 = vadd.f32 %v603_v22, %v591_v28 }
  0xad   :  { %v617_v30 = vadd.f32 %v616_v23, %v604_v29 }
  0xb2   :  { %v605_v26 = vpop.f32.mrf.mxu2 }
  0xb3   :  { %v618_v27 = vpop.f32.mrf.mxu3 }
  0xc2   :  { %v629_v31 = vpop.f32.mrf.mxu0 }
  0xc3   :  { %v642_v32 = vpop.f32.mrf.mxu1  ;;  %v630_v33 = vadd.f32 %v629_v31, %v617_v30 }
  0xc5   :  { %v643_v34 = vadd.f32 %v642_v32, %v630_v33 }
  0xca   :  { %v655_v35 = vpop.f32.mrf.mxu2  ;;  %v631_v39 = vpop.f32.mrf.mxu0 }
  0xcb   :  { %v668_v36 = vpop.f32.mrf.mxu3  ;;  %v656_v37 = vadd.f32 %v655_v35, %v643_v34  ;;  %v644_v40 = vpop.f32.mrf.mxu1 }
  0xcd   :  { %v669_v41 = vadd.f32 %v668_v36, %v656_v37 }
  0xcf   :  { %v733_v42 = vadd.f32 %v1075_v38, %v669_v41 }
  0xd1   :  { %v734_v44 = vmax.f32 %v733_v42, 0.0 }
  0xd2   :  { %v657_v45 = vpop.f32.mrf.mxu2  ;;  %v712_v47 = vpop.f32.mrf.mxu0 }
  0xd3   :  { %v670_v46 = vpop.f32.mrf.mxu3  ;;  %735 = vst [vmem:[%s1195_s6] sm:$0xff] %v734_v44  ;;  %v713_v48 = vadd.f32 %v1076_v43, %v712_v47 }
  0xd5   :  { %v716_v49 = vmax.f32 %v713_v48, 0.0 }
  0xd7   :  { %717 = vst [vmem:[%s1195_s6 + $0x8] sm:$0xff] %v716_v49 }
  0xda   :  { %v714_v50 = vpop.f32.mrf.mxu0 }
  0xdb   :  { %740 = vsyncpa [#allocation3], 1 }

</bundles_post_ra>
